<compile_context>
chip_gen: v7x
topology: tpu7x:2x2x1
jax: 0.10.0
libtpu: 0.0.40
codegen_flags: <defaults>
</compile_context>

<pallas_src>
import functools

import jax
import jax.numpy as jnp
from jax.experimental import pallas as pl
from jax.experimental.pallas import tpu as pltpu


def _sae_kernel(k, nh, x_ref, wenc_ref, benc_ref, wdec_ref,
                sparse_ref, recon_ref, feat_ref, thr_ref, acc_ref):
    j = pl.program_id(1)

    # ---------------- phase 0: encoder (Linear + ReLU) into feat scratch ----
    @pl.when(j < nh)
    def _encode():
        f = jnp.dot(x_ref[...], wenc_ref[...],
                    preferred_element_type=jnp.float32)           # (tb, th)
        f = jnp.maximum(f + benc_ref[j].astype(jnp.float32), 0.0)
        fq = f.astype(feat_ref.dtype)
        feat_ref[j] = fq
        # Per-tile row maximum (XLU lane reduce), folded into the running
        # row max so the first top-k refinement pass is free.  Computed on the
        # stored (possibly bf16-rounded) values so threshold comparisons in the
        # decode phase are exactly consistent.
        tile_max = jnp.max(fq, axis=-1, keepdims=True).astype(jnp.float32)

        @pl.when(j == 0)
        def _():
            thr_ref[...] = tile_max

        @pl.when(j > 0)
        def _():
            thr_ref[...] = jnp.maximum(thr_ref[...], tile_max)

    # ---------------- phase 1: top-k threshold (once) + streamed decoder ----
    @pl.when(j >= nh)
    def _decode():
        jd = j - nh

        @pl.when(jd == 0)
        def _threshold():
            # k-th largest value per row = (k-1) refinements of the row max,
            # each taking the max over values strictly below the current
            # threshold.  Read-only passes over the feature scratch; the loop
            # carry is only (tb, 1).  All values tied at a kept level survive
            # (documented deviation from torch.topk's exactly-k tie handling);
            # rows with fewer than k positive activations end with thr <= 0,
            # which only lets zeros through (output unchanged).
            def refine(_, thr):
                def tile_body(t, cur):
                    ft = feat_ref[t].astype(jnp.float32)          # (tb, th)
                    below = jnp.where(ft < thr, ft, -jnp.inf)
                    return jnp.maximum(
                        cur, jnp.max(below, axis=-1, keepdims=True))
                neg = jnp.full(thr.shape, -jnp.inf, dtype=jnp.float32)
                return jax.lax.fori_loop(0, nh, tile_body, neg,
                                         unroll=(nh <= 4))
            # TODO(synk): for k >~ 32 switch to bisection count-above-threshold
            #             (≈log2(range) read passes independent of k).
            thr_ref[...] = jax.lax.fori_loop(0, k - 1, refine, thr_ref[...],
                                             unroll=(k <= 8))

        # Per-tile sparsification mask, hidden under the decode matmul.
        f = feat_ref[jd].astype(jnp.float32)                      # (tb, th)
        sp = jnp.where(f >= thr_ref[...], f, 0.0)
        contrib = jnp.dot(sp.astype(wdec_ref.dtype), wdec_ref[...],
                          preferred_element_type=jnp.float32)

        @pl.when(jd == 0)
        def _():
            acc_ref[...] = contrib          # no zero-fill + add on first step

        @pl.when(jd > 0)
        def _():
            acc_ref[...] += contrib

        sparse_ref[...] = sp.astype(sparse_ref.dtype)

        @pl.when(jd == nh - 1)
        def _():
            recon_ref[...] = acc_ref[...].astype(recon_ref.dtype)


def _vmem_capacity_bytes():
    try:
        return int(pltpu.get_tpu_info().vmem_capacity_bytes)
    except Exception:
        return 128 * 1024 * 1024            # v5e/v6e default


def _weight_specs(D, th, nh, deep):
    enc_map = lambda i, j: (0, jnp.minimum(j, nh - 1))
    dec_map = lambda i, j: (jnp.maximum(j - nh, 0), 0)
    if deep:
        try:        # 3-deep weight buffering hides DMA jitter on 128 MiB parts
            return (pl.BlockSpec((D, th), enc_map, pipeline_mode=pl.Buffered(3)),
                    pl.BlockSpec((th, D), dec_map, pipeline_mode=pl.Buffered(3)))
        except Exception:
            pass    # fall back to default double-buffering
    return pl.BlockSpec((D, th), enc_map), pl.BlockSpec((th, D), dec_map)


def topk_sae_forward(x, w_enc_t, b_enc, w_dec_t, k, *,
                     tb=None, th=512, feat_dtype=None):
    """x: (B, D); w_enc_t: (D, H); b_enc: (H,) or (1, H); w_dec_t: (H, D).

    Returns (sparse_features (B, H), reconstruction (B, D)) in x.dtype.
    Pass x / weights in bf16 for 2x MXU rate and half the weight DMA (the
    kernel is weight-HBM bound at realistic SAE sizes); top-k selection itself
    always runs in f32.
    """
    B, D = x.shape
    H = w_enc_t.shape[1]
    b_enc = b_enc.reshape(1, H)
    k = int(max(1, min(k, H)))

    # ---- per-generation defaults --------------------------------------------
    vmem_cap = _vmem_capacity_bytes()
    big_vmem = vmem_cap >= 96 * 1024 * 1024          # v5e/v6e (128 MiB) vs v7x
    if tb is None:
        tb = 256 if big_vmem else 128                # larger batch tile halves
                                                     # weight re-streaming

    tb = min(tb, B)
    if tb < B and tb % 8:
        tb = min(B, -(-tb // 8) * 8)
    th = min(th, H)
    if th < H and th % 128:
        th = -(-th // 128) * 128
        if th >= H:
            th = H

    # ---- pad ragged batch / hidden dims (exact: padded features are 0) ------
    Bp = -(-B // tb) * tb
    Hp = -(-H // th) * th
    if Bp != B:
        x = jnp.pad(x, ((0, Bp - B), (0, 0)))
    if Hp != H:
        w_enc_t = jnp.pad(w_enc_t, ((0, 0), (0, Hp - H)))
        b_enc = jnp.pad(b_enc, ((0, 0), (0, Hp - H)))
        w_dec_t = jnp.pad(w_dec_t, ((0, Hp - H), (0, 0)))
    nh = Hp // th
    b_enc = b_enc.reshape(nh, 1, th)                 # one resident bias block

    if feat_dtype is None:
        # On 64 MiB-VMEM parts (v7x) fall back to a bf16 feature scratch once
        # the f32 scratch would dominate the budget.
        feat_dtype = (jnp.bfloat16
                      if (not big_vmem and tb * Hp * 4 > 16 * 1024 * 1024)
                      else jnp.float32)

    deep = big_vmem and nh >= 4
    wenc_spec, wdec_spec = _weight_specs(D, th, nh, deep)

    # ---- VMEM budget: actual per-tile requirement + headroom, per chip ------
    def _isz(a):
        return jnp.dtype(a.dtype).itemsize
    nbuf = 3 if deep else 2
    vmem_needed = (
        nh * tb * th * jnp.dtype(feat_dtype).itemsize   # feature scratch
        + tb * D * 4                                    # f32 recon accumulator
        + tb * 128 * 4                                  # threshold (lane pad)
        + 2 * tb * D * _isz(x)                          # x tile buffers
        + nbuf * D * th * _isz(w_enc_t)                 # W_enc tile buffers
        + nh * 8 * th * _isz(b_enc)                     # resident bias
        + nbuf * th * D * _isz(w_dec_t)                 # W_dec tile buffers
        + 2 * tb * th * _isz(x)                         # sparse out buffers
        + 2 * tb * D * _isz(x))                         # recon out buffers
    vmem_limit = int(min(max(vmem_needed * 1.4, 32 * 1024 * 1024),
                         vmem_cap * 0.85))

    kernel = functools.partial(_sae_kernel, k, nh)

    sparse, recon = pl.pallas_call(
        kernel,
        out_shape=(jax.ShapeDtypeStruct((Bp, Hp), x.dtype),
                   jax.ShapeDtypeStruct((Bp, D), x.dtype)),
        grid_spec=pltpu.PrefetchScalarGridSpec(
            num_scalar_prefetch=0,
            grid=(Bp // tb, 2 * nh),
            in_specs=[
                # x batch tile: resident across the whole j sweep.
                pl.BlockSpec((tb, D), lambda i, j: (i, 0)),
                # encoder weight: streamed (D, th) column tiles during encode.
                wenc_spec,
                # encoder bias: single resident block, indexed by tile in-kernel.
                pl.BlockSpec((nh, 1, th), lambda i, j: (0, 0, 0)),
                # decoder weight: streamed (th, D) row tiles during decode.
                wdec_spec,
            ],
            out_specs=[
                # sparse features, written tile-by-tile in the decode phase.
                pl.BlockSpec((tb, th), lambda i, j: (i, jnp.maximum(j - nh, 0))),
                # reconstruction, accumulated and written on the last step.
                pl.BlockSpec((tb, D), lambda i, j: (i, 0)),
            ],
            scratch_shapes=[
                pltpu.VMEM((nh, tb, th), feat_dtype),   # features
                pltpu.VMEM((tb, 1), jnp.float32),       # running row max / thr
                pltpu.VMEM((tb, D), jnp.float32),       # recon accumulator
            ],
        ),
        compiler_params=pltpu.CompilerParams(
            dimension_semantics=("parallel", "arbitrary"),
            vmem_limit_bytes=vmem_limit,
        ),
    )(x, w_enc_t, b_enc, w_dec_t)

    return sparse[:B, :H], recon[:B, :]


if __name__ == "__main__":
    # High-precision reference matmuls so the pure-JAX check is apples-to-apples
    # with the kernel's f32 accumulation.
    jax.config.update("jax_default_matmul_precision", "highest")

    def reference(x, w_enc, b_enc, w_dec, k):
        feat = jnp.maximum(x @ w_enc.T + b_enc, 0.0)
        vals, idxs = jax.lax.top_k(feat, k)
        sparse = jax.vmap(lambda s, i, v: s.at[i].set(v))(
            jnp.zeros_like(feat), idxs, vals)
        return sparse, sparse @ w_dec.T

    key = jax.random.PRNGKey(0)

    # ---- test 1: tiny single-tile case (matches module init: b=0, enc=dec^T)
    B, D, H, k = 16, 16, 32, 4
    kx, kw, key = jax.random.split(key, 3)
    w_dec = jax.random.normal(kw, (D, H), jnp.float32) * (2.0 / D) ** 0.5
    w_enc = w_dec.T                                    # (H, D), per initialize_weights
    b_enc = jnp.zeros((H,), jnp.float32)
    x = jax.random.normal(kx, (B, D), jnp.float32)

    sparse, recon = topk_sae_forward(x, w_enc.T, b_enc, w_dec.T, k)
    jax.block_until_ready((sparse, recon))
    sparse_ref, recon_ref = reference(x, w_enc, b_enc, w_dec, k)
    assert sparse.shape == (B, H) and recon.shape == (B, D)
    assert jnp.allclose(sparse, sparse_ref, atol=1e-4), "test1 sparse mismatch"
    assert jnp.allclose(recon, recon_ref, atol=1e-4), "test1 recon mismatch"

    # ---- test 2: multi-tile H sweep + ragged batch/hidden (padding path) ----
    B, D, H, k = 20, 128, 300, 5
    kx, kw, kb, key = jax.random.split(key, 4)
    w_dec = jax.random.normal(kw, (D, H), jnp.float32) * (2.0 / D) ** 0.5
    w_enc = w_dec.T
    b_enc = 0.1 * jax.random.normal(kb, (H,), jnp.float32)
    x = jax.random.normal(kx, (B, D), jnp.float32)

    sparse, recon = topk_sae_forward(x, w_enc.T, b_enc, w_dec.T, k,
                                     tb=16, th=128)
    jax.block_until_ready((sparse, recon))
    sparse_ref, recon_ref = reference(x, w_enc, b_enc, w_dec, k)
    assert sparse.shape == (B, H) and recon.shape == (B, D)
    assert jnp.allclose(sparse, sparse_ref, atol=1e-4), "test2 sparse mismatch"
    assert jnp.allclose(recon, recon_ref, atol=1e-4), "test2 recon mismatch"

    print("KERNEL_OK")
</pallas_src>

<mosaic_0001>
module attributes {stable_mosaic.version = 11 : i64} {
  func.func @_sae_kernel(%arg0: i32, %arg1: i32, %arg2: memref<16x16xf32, #tpu.memory_space<vmem>>, %arg3: memref<16x32xf32, #tpu.memory_space<vmem>>, %arg4: memref<1x1x32xf32, #tpu.memory_space<vmem>>, %arg5: memref<32x16xf32, #tpu.memory_space<vmem>>, %arg6: memref<16x32xf32, #tpu.memory_space<vmem>>, %arg7: memref<16x16xf32, #tpu.memory_space<vmem>>, %arg8: memref<1x16x32xf32, #tpu.memory_space<vmem>>, %arg9: memref<16x1xf32, #tpu.memory_space<vmem>>, %arg10: memref<16x16xf32, #tpu.memory_space<vmem>>) attributes {dimension_semantics = [#tpu.dimension_semantics<parallel>, #tpu.dimension_semantics<arbitrary>], iteration_bounds = array<i64: 1, 2>, scalar_prefetch = 0 : i64, scratch_operands = 3 : i64, tpu.core_type = #tpu.core_type<tc>, window_params = [{transform_indices = @transform_0, window_bounds = array<i64: 16, 16>}, {transform_indices = @transform_1, window_bounds = array<i64: 16, 32>}, {pipeline_mode = #tpu.pipeline_mode<synchronous>, transform_indices = @transform_2, window_bounds = array<i64: 1, 1, 32>}, {transform_indices = @transform_3, window_bounds = array<i64: 32, 16>}, {transform_indices = @transform_4, window_bounds = array<i64: 16, 32>}, {transform_indices = @transform_5, window_bounds = array<i64: 16, 16>}]} {
    %c1_i32 = arith.constant 1 : i32
    %0 = arith.cmpi slt, %arg1, %c1_i32 : i32
    %1 = arith.extui %0 : i1 to i32
    %c0_i32 = arith.constant 0 : i32
    %2 = arith.cmpi ne, %1, %c0_i32 : i32
    scf.if %2 {
      %c0 = arith.constant 0 : index
      %c0_2 = arith.constant 0 : index
      %6 = vector.load %arg2[%c0, %c0_2] : memref<16x16xf32, #tpu.memory_space<vmem>>, vector<16x16xf32>
      %c0_3 = arith.constant 0 : index
      %c0_4 = arith.constant 0 : index
      %7 = vector.load %arg3[%c0_3, %c0_4] : memref<16x32xf32, #tpu.memory_space<vmem>>, vector<16x32xf32>
      %cst = arith.constant dense<0.000000e+00> : vector<16x32xf32>
      %8 = tpu.matmul %6, %7, %cst {dimension_numbers = #tpu.dot_dimension_numbers<[1], [0], [0], [1], [0, 0, 1, 1], [], []>, precision = #tpu.contract_precision<fp32>} : vector<16x16xf32>, vector<16x32xf32>, vector<16x32xf32> -> vector<16x32xf32>
      %9 = arith.index_cast %arg1 : i32 to index
      %c0_5 = arith.constant 0 : index
      %c0_6 = arith.constant 0 : index
      %10 = vector.load %arg4[%9, %c0_5, %c0_6] : memref<1x1x32xf32, #tpu.memory_space<vmem>>, vector<1x1x32xf32>
      %11 = vector.shape_cast %10 : vector<1x1x32xf32> to vector<1x32xf32>
      %12 = vector.broadcast %11 : vector<1x32xf32> to vector<16x32xf32>
      %13 = arith.addf %8, %12 : vector<16x32xf32>
      %cst_7 = arith.constant 0.000000e+00 : f32
      %14 = vector.broadcast %cst_7 : f32 to vector<16x32xf32>
      %15 = arith.maximumf %13, %14 : vector<16x32xf32>
      %16 = arith.index_cast %arg1 : i32 to index
      %c0_8 = arith.constant 0 : index
      %c0_9 = arith.constant 0 : index
      %17 = vector.load %arg8[%16, %c0_8, %c0_9] : memref<1x16x32xf32, #tpu.memory_space<vmem>>, vector<1x16x32xf32>
      %18 = vector.shape_cast %17 : vector<1x16x32xf32> to vector<16x32xf32>
      %19 = vector.shape_cast %15 : vector<16x32xf32> to vector<1x16x32xf32>
      tpu.vector_store %arg8[%16, %c0_8, %c0_9], %19 {strides = array<i32>} : memref<1x16x32xf32, #tpu.memory_space<vmem>>, vector<1x16x32xf32>,
      %cst_10 = arith.constant dense<0xFF800000> : vector<16xf32>
      %20 = vector.multi_reduction <maximumf>, %15, %cst_10 [1] : vector<16x32xf32> to vector<16xf32>
      %21 = vector.shape_cast %20 : vector<16xf32> to vector<16x1xf32>
      %c0_i32_11 = arith.constant 0 : i32
      %22 = arith.cmpi eq, %arg1, %c0_i32_11 : i32
      %23 = arith.extui %22 : i1 to i32
      %c0_i32_12 = arith.constant 0 : i32
      %24 = arith.cmpi ne, %23, %c0_i32_12 : i32
      scf.if %24 {
        %c0_15 = arith.constant 0 : index
        %c0_16 = arith.constant 0 : index
        %28 = vector.load %arg9[%c0_15, %c0_16] : memref<16x1xf32, #tpu.memory_space<vmem>>, vector<16x1xf32>
        tpu.vector_store %arg9[%c0_15, %c0_16], %21 {strides = array<i32>} : memref<16x1xf32, #tpu.memory_space<vmem>>, vector<16x1xf32>,
      } else {
      }
      %c0_i32_13 = arith.constant 0 : i32
      %25 = arith.cmpi sgt, %arg1, %c0_i32_13 : i32
      %26 = arith.extui %25 : i1 to i32
      %c0_i32_14 = arith.constant 0 : i32
      %27 = arith.cmpi ne, %26, %c0_i32_14 : i32
      scf.if %27 {
        %c0_15 = arith.constant 0 : index
        %c0_16 = arith.constant 0 : index
        %28 = vector.load %arg9[%c0_15, %c0_16] : memref<16x1xf32, #tpu.memory_space<vmem>>, vector<16x1xf32>
        %29 = arith.maximumf %28, %21 : vector<16x1xf32>
        %c0_17 = arith.constant 0 : index
        %c0_18 = arith.constant 0 : index
        %30 = vector.load %arg9[%c0_17, %c0_18] : memref<16x1xf32, #tpu.memory_space<vmem>>, vector<16x1xf32>
        tpu.vector_store %arg9[%c0_17, %c0_18], %29 {strides = array<i32>} : memref<16x1xf32, #tpu.memory_space<vmem>>, vector<16x1xf32>,
      } else {
      }
    } else {
    }
    %c1_i32_0 = arith.constant 1 : i32
    %3 = arith.cmpi sge, %arg1, %c1_i32_0 : i32
    %4 = arith.extui %3 : i1 to i32
    %c0_i32_1 = arith.constant 0 : i32
    %5 = arith.cmpi ne, %4, %c0_i32_1 : i32
    scf.if %5 {
      %c1_i32_2 = arith.constant 1 : i32
      %6 = arith.subi %arg1, %c1_i32_2 : i32
      %c0_i32_3 = arith.constant 0 : i32
      %7 = arith.cmpi eq, %6, %c0_i32_3 : i32
      %8 = arith.extui %7 : i1 to i32
      %c0_i32_4 = arith.constant 0 : i32
      %9 = arith.cmpi ne, %8, %c0_i32_4 : i32
      scf.if %9 {
        %c0_19 = arith.constant 0 : index
        %c0_20 = arith.constant 0 : index
        %30 = vector.load %arg9[%c0_19, %c0_20] : memref<16x1xf32, #tpu.memory_space<vmem>>, vector<16x1xf32>
        %c0_i32_21 = arith.constant 0 : i32
        %cst_22 = arith.constant 0xFF800000 : f32
        %31 = vector.broadcast %cst_22 : f32 to vector<16x1xf32>
        %c0_i32_23 = arith.constant 0 : i32
        %32 = arith.index_cast %c0_i32_23 : i32 to index
        %c0_24 = arith.constant 0 : index
        %c0_25 = arith.constant 0 : index
        %33 = vector.load %arg8[%32, %c0_24, %c0_25] : memref<1x16x32xf32, #tpu.memory_space<vmem>>, vector<1x16x32xf32>
        %34 = vector.shape_cast %33 : vector<1x16x32xf32> to vector<16x32xf32>
        %35 = vector.broadcast %30 : vector<16x1xf32> to vector<16x32xf32>
        %36 = arith.cmpf olt, %34, %35 : vector<16x32xf32>
        %cst_26 = arith.constant 0xFF800000 : f32
        %37 = vector.broadcast %cst_26 : f32 to vector<16x32xf32>
        %38 = arith.select %36, %34, %37 : vector<16x32xi1>, vector<16x32xf32>
        %cst_27 = arith.constant dense<0xFF800000> : vector<16xf32>
        %39 = vector.multi_reduction <maximumf>, %38, %cst_27 [1] : vector<16x32xf32> to vector<16xf32>
        %40 = vector.shape_cast %39 : vector<16xf32> to vector<16x1xf32>
        %41 = arith.maximumf %31, %40 : vector<16x1xf32>
        %c1_i32_28 = arith.constant 1 : i32
        %c1_i32_29 = arith.constant 1 : i32
        %cst_30 = arith.constant 0xFF800000 : f32
        %42 = vector.broadcast %cst_30 : f32 to vector<16x1xf32>
        %c0_i32_31 = arith.constant 0 : i32
        %43 = arith.index_cast %c0_i32_31 : i32 to index
        %c0_32 = arith.constant 0 : index
        %c0_33 = arith.constant 0 : index
        %44 = vector.load %arg8[%43, %c0_32, %c0_33] : memref<1x16x32xf32, #tpu.memory_space<vmem>>, vector<1x16x32xf32>
        %45 = vector.shape_cast %44 : vector<1x16x32xf32> to vector<16x32xf32>
        %46 = vector.broadcast %41 : vector<16x1xf32> to vector<16x32xf32>
        %47 = arith.cmpf olt, %45, %46 : vector<16x32xf32>
        %cst_34 = arith.constant 0xFF800000 : f32
        %48 = vector.broadcast %cst_34 : f32 to vector<16x32xf32>
        %49 = arith.select %47, %45, %48 : vector<16x32xi1>, vector<16x32xf32>
        %cst_35 = arith.constant dense<0xFF800000> : vector<16xf32>
        %50 = vector.multi_reduction <maximumf>, %49, %cst_35 [1] : vector<16x32xf32> to vector<16xf32>
        %51 = vector.shape_cast %50 : vector<16xf32> to vector<16x1xf32>
        %52 = arith.maximumf %42, %51 : vector<16x1xf32>
        %c1_i32_36 = arith.constant 1 : i32
        %c2_i32 = arith.constant 2 : i32
        %cst_37 = arith.constant 0xFF800000 : f32
        %53 = vector.broadcast %cst_37 : f32 to vector<16x1xf32>
        %c0_i32_38 = arith.constant 0 : i32
        %54 = arith.index_cast %c0_i32_38 : i32 to index
        %c0_39 = arith.constant 0 : index
        %c0_40 = arith.constant 0 : index
        %55 = vector.load %arg8[%54, %c0_39, %c0_40] : memref<1x16x32xf32, #tpu.memory_space<vmem>>, vector<1x16x32xf32>
        %56 = vector.shape_cast %55 : vector<1x16x32xf32> to vector<16x32xf32>
        %57 = vector.broadcast %52 : vector<16x1xf32> to vector<16x32xf32>
        %58 = arith.cmpf olt, %56, %57 : vector<16x32xf32>
        %cst_41 = arith.constant 0xFF800000 : f32
        %59 = vector.broadcast %cst_41 : f32 to vector<16x32xf32>
        %60 = arith.select %58, %56, %59 : vector<16x32xi1>, vector<16x32xf32>
        %cst_42 = arith.constant dense<0xFF800000> : vector<16xf32>
        %61 = vector.multi_reduction <maximumf>, %60, %cst_42 [1] : vector<16x32xf32> to vector<16xf32>
        %62 = vector.shape_cast %61 : vector<16xf32> to vector<16x1xf32>
        %63 = arith.maximumf %53, %62 : vector<16x1xf32>
        %c1_i32_43 = arith.constant 1 : i32
        %c0_44 = arith.constant 0 : index
        %c0_45 = arith.constant 0 : index
        %64 = vector.load %arg9[%c0_44, %c0_45] : memref<16x1xf32, #tpu.memory_space<vmem>>, vector<16x1xf32>
        tpu.vector_store %arg9[%c0_44, %c0_45], %63 {strides = array<i32>} : memref<16x1xf32, #tpu.memory_space<vmem>>, vector<16x1xf32>,
      } else {
      }
      %10 = arith.index_cast %6 : i32 to index
      %c0 = arith.constant 0 : index
      %c0_5 = arith.constant 0 : index
      %11 = vector.load %arg8[%10, %c0, %c0_5] : memref<1x16x32xf32, #tpu.memory_space<vmem>>, vector<1x16x32xf32>
      %12 = vector.shape_cast %11 : vector<1x16x32xf32> to vector<16x32xf32>
      %c0_6 = arith.constant 0 : index
      %c0_7 = arith.constant 0 : index
      %13 = vector.load %arg9[%c0_6, %c0_7] : memref<16x1xf32, #tpu.memory_space<vmem>>, vector<16x1xf32>
      %14 = vector.broadcast %13 : vector<16x1xf32> to vector<16x32xf32>
      %15 = arith.cmpf oge, %12, %14 : vector<16x32xf32>
      %cst = arith.constant 0.000000e+00 : f32
      %16 = vector.broadcast %cst : f32 to vector<16x32xf32>
      %17 = arith.select %15, %12, %16 : vector<16x32xi1>, vector<16x32xf32>
      %c0_8 = arith.constant 0 : index
      %c0_9 = arith.constant 0 : index
      %18 = vector.load %arg5[%c0_8, %c0_9] : memref<32x16xf32, #tpu.memory_space<vmem>>, vector<32x16xf32>
      %cst_10 = arith.constant dense<0.000000e+00> : vector<16x16xf32>
      %19 = tpu.matmul %17, %18, %cst_10 {dimension_numbers = #tpu.dot_dimension_numbers<[1], [0], [0], [1], [0, 0, 1, 1], [], []>, precision = #tpu.contract_precision<fp32>} : vector<16x32xf32>, vector<32x16xf32>, vector<16x16xf32> -> vector<16x16xf32>
      %c0_i32_11 = arith.constant 0 : i32
      %20 = arith.cmpi eq, %6, %c0_i32_11 : i32
      %21 = arith.extui %20 : i1 to i32
      %c0_i32_12 = arith.constant 0 : i32
      %22 = arith.cmpi ne, %21, %c0_i32_12 : i32
      scf.if %22 {
        %c0_19 = arith.constant 0 : index
        %c0_20 = arith.constant 0 : index
        %30 = vector.load %arg10[%c0_19, %c0_20] : memref<16x16xf32, #tpu.memory_space<vmem>>, vector<16x16xf32>
        tpu.vector_store %arg10[%c0_19, %c0_20], %19 {strides = array<i32>} : memref<16x16xf32, #tpu.memory_space<vmem>>, vector<16x16xf32>,
      } else {
      }
      %c0_i32_13 = arith.constant 0 : i32
      %23 = arith.cmpi sgt, %6, %c0_i32_13 : i32
      %24 = arith.extui %23 : i1 to i32
      %c0_i32_14 = arith.constant 0 : i32
      %25 = arith.cmpi ne, %24, %c0_i32_14 : i32
      scf.if %25 {
        %c0_19 = arith.constant 0 : index
        %c0_20 = arith.constant 0 : index
        %30 = vector.load %arg10[%c0_19, %c0_20] : memref<16x16xf32, #tpu.memory_space<vmem>>, vector<16x16xf32>
        %31 = arith.addf %30, %19 : vector<16x16xf32>
        %c0_21 = arith.constant 0 : index
        %c0_22 = arith.constant 0 : index
        %32 = vector.load %arg10[%c0_21, %c0_22] : memref<16x16xf32, #tpu.memory_space<vmem>>, vector<16x16xf32>
        tpu.vector_store %arg10[%c0_21, %c0_22], %31 {strides = array<i32>} : memref<16x16xf32, #tpu.memory_space<vmem>>, vector<16x16xf32>,
      } else {
      }
      %c0_15 = arith.constant 0 : index
      %c0_16 = arith.constant 0 : index
      %26 = vector.load %arg6[%c0_15, %c0_16] : memref<16x32xf32, #tpu.memory_space<vmem>>, vector<16x32xf32>
      tpu.vector_store %arg6[%c0_15, %c0_16], %17 {strides = array<i32>} : memref<16x32xf32, #tpu.memory_space<vmem>>, vector<16x32xf32>,
      %c0_i32_17 = arith.constant 0 : i32
      %27 = arith.cmpi eq, %6, %c0_i32_17 : i32
      %28 = arith.extui %27 : i1 to i32
      %c0_i32_18 = arith.constant 0 : i32
      %29 = arith.cmpi ne, %28, %c0_i32_18 : i32
      scf.if %29 {
        %c0_19 = arith.constant 0 : index
        %c0_20 = arith.constant 0 : index
        %30 = vector.load %arg10[%c0_19, %c0_20] : memref<16x16xf32, #tpu.memory_space<vmem>>, vector<16x16xf32>
        %c0_21 = arith.constant 0 : index
        %c0_22 = arith.constant 0 : index
        %31 = vector.load %arg7[%c0_21, %c0_22] : memref<16x16xf32, #tpu.memory_space<vmem>>, vector<16x16xf32>
        tpu.vector_store %arg7[%c0_21, %c0_22], %30 {strides = array<i32>} : memref<16x16xf32, #tpu.memory_space<vmem>>, vector<16x16xf32>,
      } else {
      }
    } else {
    }
    return
  }
  func.func @transform_0(%arg0: i32, %arg1: i32) -> (i32, i32) {
    %c0_i32 = arith.constant 0 : i32
    %c0_i32_0 = arith.constant 0 : i32
    return %arg0, %c0_i32 : i32, i32
  }
  func.func @transform_1(%arg0: i32, %arg1: i32) -> (i32, i32) {
    %c0_i32 = arith.constant 0 : i32
    %0 = arith.minsi %arg1, %c0_i32 : i32
    %c0_i32_0 = arith.constant 0 : i32
    %c0_i32_1 = arith.constant 0 : i32
    return %c0_i32_0, %0 : i32, i32
  }
  func.func @transform_2(%arg0: i32, %arg1: i32) -> (i32, i32, i32) {
    %c0_i32 = arith.constant 0 : i32
    %c0_i32_0 = arith.constant 0 : i32
    %c0_i32_1 = arith.constant 0 : i32
    %c0_i32_2 = arith.constant 0 : i32
    return %c0_i32, %c0_i32_0, %c0_i32_1 : i32, i32, i32
  }
  func.func @transform_3(%arg0: i32, %arg1: i32) -> (i32, i32) {
    %c1_i32 = arith.constant 1 : i32
    %0 = arith.subi %arg1, %c1_i32 : i32
    %c0_i32 = arith.constant 0 : i32
    %1 = arith.maxsi %0, %c0_i32 : i32
    %c0_i32_0 = arith.constant 0 : i32
    %c0_i32_1 = arith.constant 0 : i32
    return %1, %c0_i32_0 : i32, i32
  }
  func.func @transform_4(%arg0: i32, %arg1: i32) -> (i32, i32) {
    %c1_i32 = arith.constant 1 : i32
    %0 = arith.subi %arg1, %c1_i32 : i32
    %c0_i32 = arith.constant 0 : i32
    %1 = arith.maxsi %0, %c0_i32 : i32
    %c0_i32_0 = arith.constant 0 : i32
    return %arg0, %1 : i32, i32
  }
  func.func @transform_5(%arg0: i32, %arg1: i32) -> (i32, i32) {
    %c0_i32 = arith.constant 0 : i32
    %c0_i32_0 = arith.constant 0 : i32
    return %arg0, %c0_i32 : i32, i32
  }
}

</mosaic_0001>

<bundles_post_ra>
// kernel: tpu_custom_call.1
= control target key start
LH: loop header
LB: loop body
LE: loop exit
PB: predicated region body
PF: predicated region fallthrough
CT: control target
= control target key end

     0   :  { %11 = vsyncpa [#allocation6], 0  ;;  %s2395_s0 = inlined_call_operand.vmem [shape: f32[16,16], index: 0, kind: input, shape index: {}]   ;;  %s2396_s1 = inlined_call_operand.vmem [shape: f32[16,32], index: 1, kind: input, shape index: {}]   ;;  %s2397_s2 = inlined_call_operand.vmem [shape: f32[1,1,32], index: 2, kind: input, shape index: {}]   ;;  %s2398_s3 = inlined_call_operand.vmem [shape: f32[32,16], index: 3, kind: input, shape index: {}]   ;;  %s2399_s4 = inlined_call_operand.hbm [shape: f32[16,32], index: 4, kind: output, shape index: {0}]   ;;  %s2400_s5 = inlined_call_operand.hbm [shape: f32[16,16], index: 5, kind: output, shape index: {1}]  }
   0x1   :  { %13 = vsyncpa [#allocation6 + $0x1], 0 }
   0x2   :  { %14 = vsyncpa [#allocation8], 0  ;;  %s2188_s18 = smov 0   ;;  %s2190_s19 = smov 0  }
   0x3   :  { %s2192_s20 = smov 0   ;;  %s2194_s21 = smov 0  }
   0x4   :  { %s2196_s22 = smov 0  }
   0x5 LB: > { %s1678_s23 = sadd.s32 4294967295, %s2150_s22   ;;  %s1679_s24 = sadd.s32 4294967294, %s2150_s22   ;;  %s2150_s22 = sphi %s2196_s22, %s20_s22   ;;  %s2146_s21 = sphi %s2194_s21, %s2406_s21   ;;  %s2142_s20 = sphi %s2192_s20, %s2405_s20   ;;  %s2138_s19 = sphi %s2190_s19, %s2385_s19   ;;  %s2134_s18 = sphi %s2188_s18, %s2404_s18  }
   0x6   : > { %s29_s25 = sadd.s32 1, %s2146_s21  ;;  %p2131_p1 = scmp.ne.s32.totalorder %s2138_s19, 0 }
   0x7   : > { %p30_p0 = scmp.ge.s32.totalorder %s29_s25, 2  ;;  %p2219_p2 = scmp.eq.s32.totalorder %s1678_s23, 1 }
   0x8   : > { %p172_p3 = scmp.ne.s32.totalorder %s2138_s19, %s2134_s18  ;;  %p173_p5 = scmp.eq.s32.totalorder %s1679_s24, 1 }
   0x9   : > { %s2408_s25 = smov (%p30_p0, %s29_s25), 0  ;;  %p2227_p4 = por %p2131_p1, %p2219_p2 }
   0xa   : > { %p2231_p6 = por %p173_p5, %p172_p3  ;;  %p1687_p7 = scmp.ge.s32.totalorder %s2150_s22, 1 }
   0xb   : > { %p255_p8 = scmp.lt.s32.totalorder %s2150_s22, 3 }
   0xd   : > { %p256_p9 = pnand %p1687_p7, %p255_p8 }
   0xe   : > { %s292_s29 = sand.u32 (!%p256_p9), 1, %s2138_s19   ;;  %p303_p10 = scmp.lt.s32.totalorder (!%p256_p9), %s2142_s20, 0 }
   0xf   : > { %259 = sbr.rel (%p256_p9) target bundleno = 1461 (0x5b5), region = 36  ;;  %s1688_s30 = sshll.u32 (!%p256_p9), %s292_s29, 4 }
  0x10   : > { %s2242_s6 = sadd.s32 (!%p256_p9), 4294967295, %s2142_s20  ;;  %s2258_s23 = scalar_lea.vmem (!%p256_p9), [#allocation5], %s1688_s30 }
  0x11   : > { %p312_p11 = scmp.gt.s32.totalorder (!%p256_p9), %s2242_s6, 0  ;;  %p1696_p13 = scmp.ge.s32.totalorder (!%p256_p9), %s2142_s20, 1 }
  0x16   : > { %s304_s7 = scalar_select %p303_p10, %s2142_s20, 0 }
  0x17   : > { %s2247_s8 = scalar_select %p312_p11, %s2242_s6, 0 }
  0x18   : > { %s2410_s7 = smov (!%p303_p10, %s304_s7), 0  ;;  %331 = sbr.rel (%p1696_p13) target bundleno = 432 (0x1b0), region = 40 }
  0x19   : > { %s1694_s9 = sshll.u32 %s2247_s8, 2  ;;  %s1692_s10 = sshll.u32 %s2410_s7, 3  ;;  %v332_v2 = vld [vmem:[%s2395_s0] sm:$0xff] (!%p1696_p13)  ;;  %vm344_vm0 = vcmask (!%p1696_p13), 130048   ;;  %v333_v5 = vld [vmem:[%s2395_s0 + $0x8] sm:$0xff] (!%p1696_p13)  ;;  %vm857_vm1 = vcmask (!%p1696_p13), 261120  }
  0x1a   : > { %p315_p12 = scmp.lt.s32.totalorder %s1694_s9, 3  ;;  %s308_s13 = scalar_lea.vmem %s2396_s1, %s1692_s10  ;;  %v346_v6 = vsel (!%p1696_p13), %vm344_vm0, %v332_v2, 0  ;;  %v349_v7 = vsel (!%p1696_p13), %vm344_vm0, %v333_v5, 0 }
  0x1b   : > { %v334_v0 = vld [vmem:[%s308_s13] sm:$0xff] (!%p1696_p13)  ;;  %v335_v1 = vld [vmem:[%s308_s13 + $0x8] sm:$0xff] (!%p1696_p13)  ;;  %v418_v8 = vand.u32 (!%p1696_p13), 4294901760, %v346_v6  ;;  %v428_v10 = vand.u32 (!%p1696_p13), 4294901760, %v349_v7  ;;  %s336_s12 = scalar_lea.vmem (!%p1696_p13), %s2397_s2, %s2142_s20  ;;  %s1698_s13 = sshll.u32 (!%p1696_p13), %s2142_s20, 4 }
  0x1c   : > { %s2412_s9 = smov (!%p315_p12, %s1694_s9), 3  ;;  %v352_v3 = vand.u32 (!%p1696_p13), 4294901760, %v334_v0  ;;  %v355_v4 = vand.u32 (!%p1696_p13), 4294901760, %v335_v1  ;;  %v1697_v32 = vld [vmem:[%s336_s12] ss:$0 sm:$0xff] (!%p1696_p13)  ;;  %p1699_p0 = scmp.ne.s32.totalorder (!%p1696_p13), %s2142_s20, 0 }
  0x1d   : > { %s1695_s14 = sshll.u32 %s2412_s9, 3  ;;  %v419_v13 = vsub.f32 (!%p1696_p13), %v346_v6, %v418_v8  ;;  %v429_v14 = vsub.f32 (!%p1696_p13), %v349_v7, %v428_v10 }
  0x1e   : > { %s2256_s17 = scalar_lea.vmem %s2398_s3, %s1695_s14  ;;  %v1883_v9 = vpack.c.bf16 (!%p1696_p13), %v355_v4, %v352_v3  ;;  %v440_v11 = vsub.f32 (!%p1696_p13), %v334_v0, %v352_v3  ;;  %v447_v12 = vsub.f32 (!%p1696_p13), %v335_v1, %v355_v4  ;;  %s856_s14 = scalar_lea.vmem (!%p1696_p13), [#allocation2], %s1698_s13 }
  0x1f   : > { %v420_v17 = vand.u32 4294901760, %v419_v13  ;;  %v430_v18 = vand.u32 4294901760, %v429_v14  ;;  %vm870_vm2 = vcmask (!%p1699_p0), 7168  }
  0x20   : > { %1896 = vmatprep.subr.bf16.mxu0 %v1883_v9  ;;  %1884 = vmatprep.subr.bf16.mxu1 %v1883_v9  ;;  %v441_v15 = vand.u32 4294901760, %v440_v11  ;;  %v448_v16 = vand.u32 4294901760, %v447_v12  ;;  %v1891_v29 = vpack.c.bf16 %v447_v12, %v440_v11 }
  0x21   : > { %1898 = vmatpush3.bf16.msra.mxu0 %v1883_v9  ;;  %1886 = vmatpush3.bf16.msra.mxu1 %v1883_v9  ;;  %v421_v22 = vsub.f32 %v419_v13, %v420_v17  ;;  %v431_v23 = vsub.f32 %v429_v14, %v430_v18 }
  0x22   : > { %v442_v19 = vsub.f32 %v440_v11, %v441_v15  ;;  %v449_v20 = vsub.f32 %v447_v12, %v448_v16  ;;  %v1899_v21 = vpack.c.bf16 %v448_v16, %v441_v15  ;;  %1800 = vmatprep.mubr.f32.mxu0 %v420_v17 }
  0x23   : > { %v422_v26 = vand.u32 4294901760, %v421_v22  ;;  %v432_v27 = vand.u32 4294901760, %v431_v23 }
  0x24   : > { %1801 = vmatmul.mubr.f32.vlgmr.msra.gmra.mrb[0].mxu0 %v430_v18  ;;  %v443_v24 = vand.u32 4294901760, %v442_v19  ;;  %v450_v25 = vand.u32 4294901760, %v449_v20  ;;  %1900 = vmatprep.subr.bf16.mxu0 %v1899_v21 }
  0x25   : > { %1902 = vmatpush3.bf16.msra.mxu0 %v1899_v21  ;;  %1807 = vmatprep.mubr.f32.mxu0 %v418_v8 }
  0x26   : > { %v1887_v28 = vpack.c.bf16 %v450_v25, %v443_v24  ;;  %1904 = vmatprep.subr.bf16.mxu0 %v1883_v9  ;;  %1779 = vmatprep.mubr.f32.mxu1 %v422_v26 }
  0x27   : > { %1780 = vmatmul.mubr.f32.vlgmr.msra.gmra.mrb[0].mxu1 %v432_v27 }
  0x28   : > { %1888 = vmatprep.subr.bf16.mxu1 %v1887_v28  ;;  %1786 = vmatprep.mubr.f32.mxu1 %v418_v8 }
  0x29   : > { %1890 = vmatpush3.bf16.msra.mxu1 %v1887_v28 }
  0x2a   : > { %1892 = vmatprep.subr.bf16.mxu1 %v1891_v29 }
  0x2c   : > { %1808 = vmatmul.mubr.f32.vlgmr.msra.gmra.mrb[0].mxu0 %v428_v10 }
  0x2d   : > { %1906 = vmatpush3.bf16.msra.mxu0 %v1883_v9  ;;  %1814 = vmatprep.mubr.f32.mxu0 %v418_v8 }
  0x2f   : > { %1787 = vmatmul.mubr.f32.vlgmr.msra.gmra.mrb[0].mxu1 %v428_v10 }
  0x30   : > { %1894 = vmatpush3.bf16.msra.mxu1 %v1891_v29  ;;  %1793 = vmatprep.mubr.f32.mxu1 %v419_v13 }
  0x34   : > { %1815 = vmatmul.mubr.f32.vlgmr.msra.gmra.mrb[0].mxu0 %v428_v10 }
  0x37   : > { %1794 = vmatmul.mubr.f32.vlgmr.msra.gmra.mrb[0].mxu1 %v429_v14 }
 0x107   : > { %v1816_v30 = vpop.f32.mrb[0].mxu0 }
 0x108   : > { %v843_v31 = vpop.f32.mrb[1].mxu0 }
 0x10a   : > { %v1795_v33 = vpop.f32.mrb[0].mxu1 }
 0x10b   : > { %v1955_v34 = vadd.f32 %v1795_v33, %v1697_v32  ;;  %v597_v35 = vpop.f32.mrb[1].mxu1 }
 0x10c   : > { %v1957_v36 = vadd.f32 %v1697_v32, %v597_v35 }
 0x10d   : > { %v1956_v37 = vadd.f32 %v1955_v34, %v1816_v30 }
 0x10e   : > { %v1958_v38 = vadd.f32 %v1957_v36, %v843_v31 }
 0x10f   : > { %v854_v39 = vmax.f32 %v1956_v37, 0.0 }
 0x110   : > { %v853_v40 = vmax.f32 %v1958_v38, 0.0 }
 0x111   : > { %859 = vst.msk [vmem:[%s856_s14 + $0x8] sm:$0xff] %vm857_vm1, %v854_v39  ;;  %v863_v42 = vsel %vm857_vm1, %v854_v39, -inf }
 0x112   : > { %v860_v41 = vsel %vm857_vm1, %v853_v40, -inf  ;;  %858 = vst.msk [vmem:[%s856_s14] sm:$0xff] %vm857_vm1, %v853_v40 }
 0x113   : > { %861 = vmax.xlane.f32.xlu0 %v860_v41 }
 0x117   : > { %864 = vmax.xlane.f32.xlu0 %v863_v42 }
 0x19e   : > { %869 = sbr.rel (%p1699_p0) target bundleno = 422 (0x1a6), region = 44 }
 0x1a0   : > { %v862_v43 = vpop.xlane.xlu0 %861 }
 0x1a1   : > { %871 = vst.msk [vmem:[#allocation3] sm:$0xff] (!%p1699_p0), %vm870_vm2, %v862_v43 }
 0x1a4   : > { %v865_v44 = vpop.xlane.xlu0 %864 }
 0x1a5   : > { %872 = vst.msk [vmem:[#allocation3 + $0x8] sm:$0xff] %vm870_vm2, %v865_v44 }
 0x1a6 PF: > { %p1700_p1 = scmp.le.s32.totalorder %s2142_s20, 0 }
 0x1a7   : > { %vm881_vm3 = vcmask (!%p1700_p1), 7168  }
 0x1a8   : > { %876 = sbr.rel (%p1700_p1) target bundleno = 432 (0x1b0), region = 48 }
 0x1a9   : > { %v877_v45 = vld [vmem:[#allocation3] sm:$0xff] (!%p1700_p1) }
 0x1aa   : > { %v879_v47 = vmax.f32 (!%p1700_p1), %v877_v45, %v862_v43 }
 0x1ac   : > { %v878_v46 = vld [vmem:[#allocation3 + $0x8] sm:$0xff] (!%p1700_p1)  ;;  %882 = vst.msk [vmem:[#allocation3] sm:$0xff] (!%p1700_p1), %vm881_vm3, %v879_v47 }
 0x1ad   : > { %v880_v48 = vmax.f32 (!%p1700_p1), %v878_v46, %v865_v44 }
 0x1af   : > { %883 = vst.msk [vmem:[#allocation3 + $0x8] sm:$0xff] %vm881_vm3, %v880_v48 }
 0x1b0 PF: > { %p1701_p3 = scmp.lt.s32.totalorder %s2142_s20, 1 }
 0x1b1   : > { %p1703_p5 = scmp.ne.s32.totalorder (!%p1701_p3), %s2242_s6, 0 }
 0x1b2   : > { %887 = sbr.rel (%p1701_p3) target bundleno = 1411 (0x583), region = 52 }
 0x1b9   : > { %892 = sbr.rel (%p1703_p5) target bundleno = 1011 (0x3f3), region = 56  ;;  %v893_v49 = vld [vmem:[#allocation3] sm:$0xff] (!%p1703_p5)  ;;  %v2152_v50 = vmov (!%p1703_p5), 0   ;;  %v894_v51 = vld [vmem:[#allocation3 + $0x8] sm:$0xff] (!%p1703_p5)  ;;  %v895_v52 = vld [vmem:[#allocation2] sm:$0xff] (!%p1703_p5)  ;;  %vm911_vm4 = vcmask (!%p1703_p5), 261120  }
 0x1ba   : > { %2043 = vset.pattern.permute.xlu0 (!%p1703_p5), %v2152_v50  ;;  %v896_v55 = vld [vmem:[#allocation2 + $0x8] sm:$0xff] (!%p1703_p5)  ;;  %vm938_vm11 = vcmask (!%p1703_p5), 7168  }
 0x1bb   : > { %899 = vperm.xlu0 (!%p1703_p5), %2043, %v893_v49  }
 0x1bf   : > { %904 = vperm.xlu0 (!%p1703_p5), %2043, %v894_v51  }
 0x23a   : > { %v900_v53 = vpop.permute.xlu0 %899 }
 0x23b   : > { %vm907_vm5 = vcmp.lt.f32.partialorder %v895_v52, %v900_v53 }
 0x23c   : > { %v909_v54 = vsel %vm907_vm5, %v895_v52, -inf }
 0x23d   : > { %v912_v56 = vsel %vm911_vm4, %v909_v54, -inf }
 0x23e   : > { %913 = vmax.xlane.f32.xlu1 %v912_v56  ;;  %v905_v57 = vpop.permute.xlu0 %904 }
 0x23f   : > { %vm908_vm6 = vcmp.lt.f32.partialorder %v896_v55, %v905_v57 }
 0x240   : > { %v910_v58 = vsel %vm908_vm6, %v896_v55, -inf }
 0x241   : > { %v915_v59 = vsel %vm911_vm4, %v910_v58, -inf }
 0x242   : > { %916 = vmax.xlane.f32.xlu1 %v915_v59 }
 0x2cb   : > { %v914_v60 = vpop.xlane.xlu1 %913 }
 0x2cc   : > { %vm918_vm7 = vcmp.lt.f32.partialorder %v895_v52, %v914_v60 }
 0x2cd   : > { %v920_v61 = vsel %vm918_vm7, %v895_v52, -inf }
 0x2ce   : > { %v922_v62 = vsel %vm911_vm4, %v920_v61, -inf }
 0x2cf   : > { %923 = vmax.xlane.f32.xlu0 %v922_v62  ;;  %v917_v63 = vpop.xlane.xlu1 %916 }
 0x2d0   : > { %vm919_vm8 = vcmp.lt.f32.partialorder %v896_v55, %v917_v63 }
 0x2d1   : > { %v921_v0 = vsel %vm919_vm8, %v896_v55, -inf }
 0x2d2   : > { %v925_v1 = vsel %vm911_vm4, %v921_v0, -inf }
 0x2d3   : > { %926 = vmax.xlane.f32.xlu1 %v925_v1 }
 0x35c   : > { %v924_v2 = vpop.xlane.xlu0 %923 }
 0x35d   : > { %vm928_vm9 = vcmp.lt.f32.partialorder %v895_v52, %v924_v2 }
 0x35e   : > { %v930_v3 = vsel %vm928_vm9, %v895_v52, -inf }
 0x35f   : > { %v932_v4 = vsel %vm911_vm4, %v930_v3, -inf }
 0x360   : > { %v927_v5 = vpop.xlane.xlu1 %926  ;;  %933 = vmax.xlane.f32.xlu1 %v932_v4 }
 0x361   : > { %vm929_vm10 = vcmp.lt.f32.partialorder %v896_v55, %v927_v5 }
 0x362   : > { %v931_v6 = vsel %vm929_vm10, %v896_v55, -inf }
 0x363   : > { %v935_v7 = vsel %vm911_vm4, %v931_v6, -inf }
 0x364   : > { %936 = vmax.xlane.f32.xlu1 %v935_v7 }
 0x3ed   : > { %v934_v8 = vpop.xlane.xlu1 %933 }
 0x3ee   : > { %939 = vst.msk [vmem:[#allocation3] sm:$0xff] %vm938_vm11, %v934_v8 }
 0x3f1   : > { %v937_v9 = vpop.xlane.xlu1 %936 }
 0x3f2   : > { %940 = vst.msk [vmem:[#allocation3 + $0x8] sm:$0xff] %vm938_vm11, %v937_v9 }
 0x3f3 PF: > { %v2153_v11 = vmov 0   ;;  %v961_v12 = vld [vmem:[%s2256_s17] sm:$0xff]  ;;  %v962_v13 = vld [vmem:[%s2256_s17 + $0x8] sm:$0xff]  ;;  %v963_v18 = vld [vmem:[%s2256_s17 + $0x10] sm:$0xff]  ;;  %s1704_s20 = sshll.u32 %s2242_s6, 4  ;;  %vm965_vm12 = vcmask 261120  }
 0x3f4   : > { %2044 = vset.pattern.permute.xlu0 %v2153_v11  ;;  %v973_v15 = vand.u32 4294901760, %v961_v12  ;;  %v976_v16 = vand.u32 4294901760, %v962_v13  ;;  %v964_v19 = vld [vmem:[%s2256_s17 + $0x18] sm:$0xff]  ;;  %v979_v20 = vand.u32 4294901760, %v963_v18  ;;  %s942_s15 = scalar_lea.vmem [#allocation2], %s1704_s20  ;;  %vm1503_vm15 = vcmask (!%p1703_p5), 130048  }
 0x3f5   : > { %v945_v10 = vld [vmem:[#allocation3] sm:$0xff]  ;;  %v982_v21 = vand.u32 4294901760, %v964_v19  ;;  %v943_v45 = vld [vmem:[%s942_s15] sm:$0xff]  ;;  %v944_v48 = vld [vmem:[%s942_s15 + $0x8] sm:$0xff] }
 0x3f6   : > { %949 = vperm.xlu0 %2044, %v945_v10   ;;  %v2286_v17 = vpack.c.bf16 %v976_v16, %v973_v15  ;;  %v1063_v23 = vsub.f32 %v961_v12, %v973_v15  ;;  %v1070_v24 = vsub.f32 %v962_v13, %v976_v16  ;;  %v1077_v30 = vsub.f32 %v963_v18, %v979_v20 }
 0x3f7   : > { %v2294_v22 = vpack.c.bf16 %v982_v21, %v979_v20  ;;  %v1084_v31 = vsub.f32 %v964_v19, %v982_v21 }
 0x3f8   : > { %1932 = vmatprep.subr.bf16.mxu0 %v2286_v17  ;;  %1908 = vmatprep.subr.bf16.mxu1 %v2286_v17  ;;  %v1064_v25 = vand.u32 4294901760, %v1063_v23  ;;  %v1071_v26 = vand.u32 4294901760, %v1070_v24  ;;  %v1078_v34 = vand.u32 4294901760, %v1077_v30  ;;  %v1923_v43 = vpack.c.bf16 %v1070_v24, %v1063_v23 }
 0x3f9   : > { %v946_v14 = vld [vmem:[#allocation3 + $0x8] sm:$0xff]  ;;  %1934 = vmatpush3.bf16.msra.mxu0 %v2286_v17  ;;  %1910 = vmatpush3.bf16.msra.mxu1 %v2286_v17  ;;  %v1085_v35 = vand.u32 4294901760, %v1084_v31  ;;  %v1927_v44 = vpack.c.bf16 %v1084_v31, %v1077_v30 }
 0x3fa   : > { %954 = vperm.xlu0 %2044, %v946_v14   ;;  %1936 = vmatprep.subr.bf16.mxu0 %v2294_v22  ;;  %v1939_v27 = vpack.c.bf16 %v1071_v26, %v1064_v25  ;;  %v1065_v28 = vsub.f32 %v1063_v23, %v1064_v25  ;;  %v1072_v29 = vsub.f32 %v1070_v24, %v1071_v26 }
 0x3fb   : > { %1912 = vmatprep.subr.bf16.mxu1 %v2294_v22  ;;  %v1943_v37 = vpack.c.bf16 %v1085_v35, %v1078_v34  ;;  %v1079_v38 = vsub.f32 %v1077_v30, %v1078_v34  ;;  %v1086_v39 = vsub.f32 %v1084_v31, %v1085_v35 }
 0x3fc   : > { %v1066_v32 = vand.u32 4294901760, %v1065_v28  ;;  %v1073_v33 = vand.u32 4294901760, %v1072_v29 }
 0x3fd   : > { %1938 = vmatpush3.bf16.msra.mxu0 %v2294_v22  ;;  %1914 = vmatpush3.bf16.msra.mxu1 %v2294_v22  ;;  %v1080_v40 = vand.u32 4294901760, %v1079_v38  ;;  %v1087_v41 = vand.u32 4294901760, %v1086_v39 }
 0x3fe   : > { %1940 = vmatprep.subr.bf16.mxu0 %v1939_v27  ;;  %v1915_v36 = vpack.c.bf16 %v1073_v33, %v1066_v32 }
 0x3ff   : > { %v1919_v42 = vpack.c.bf16 %v1087_v41, %v1080_v40 }
 0x400   : > { %1916 = vmatprep.subr.bf16.mxu1 %v1915_v36 }
 0x475   : > { %v950_v46 = vpop.permute.xlu0 %949 }
 0x476   : > { %vm957_vm13 = vcmp.ge.f32.partialorder %v943_v45, %v950_v46 }
 0x477   : > { %v2301_v47 = vsel %vm957_vm13, %v943_v45, 0.0 }
 0x478   : > { %v967_v49 = vsel %vm965_vm12, %v2301_v47, 0 }
 0x479   : > { %v1041_v50 = vand.u32 4294901760, %v967_v49  ;;  %v955_v51 = vpop.permute.xlu0 %954 }
 0x47a   : > { %vm958_vm14 = vcmp.ge.f32.partialorder %v944_v48, %v955_v51 }
 0x47b   : > { %v1042_v52 = vsub.f32 %v967_v49, %v1041_v50  ;;  %v960_v53 = vsel %vm958_vm14, %v944_v48, 0.0 }
 0x47c   : > { %v970_v54 = vsel %vm965_vm12, %v960_v53, 0 }
 0x47d   : > { %v1051_v55 = vand.u32 4294901760, %v970_v54  ;;  %v1043_v56 = vand.u32 4294901760, %v1042_v52 }
 0x47f   : > { %v1052_v57 = vsub.f32 %v970_v54, %v1051_v55  ;;  %1858 = vmatprep.mubr.f32.mxu0 %v1043_v56  ;;  %v1044_v58 = vsub.f32 %v1042_v52, %v1043_v56 }
 0x481   : > { %v1045_v59 = vand.u32 4294901760, %v1044_v58  ;;  %v1053_v60 = vand.u32 4294901760, %v1052_v57 }
 0x483   : > { %1825 = vmatprep.mubr.f32.mxu1 %v1045_v59  ;;  %1859 = vmatmul.mubr.f32.vlgmr.msra.gmra.mrb[0].mxu0 %v1053_v60  ;;  %v1054_v61 = vsub.f32 %v1052_v57, %v1053_v60 }
 0x484   : > { %1942 = vmatpush3.bf16.msra.mxu0 %v1939_v27  ;;  %1869 = vmatprep.mubr.f32.mxu0 %v1041_v50 }
 0x485   : > { %v1055_v62 = vand.u32 4294901760, %v1054_v61  ;;  %1944 = vmatprep.subr.bf16.mxu0 %v1943_v37 }
 0x487   : > { %1826 = vmatmul.mubr.f32.vlgmr.msra.gmra.mrb[0].mxu1 %v1055_v62 }
 0x488   : > { %1918 = vmatpush3.bf16.msra.mxu1 %v1915_v36  ;;  %1836 = vmatprep.mubr.f32.mxu1 %v1041_v50 }
 0x489   : > { %1946 = vmatpush3.bf16.msra.mxu0 %v1943_v37  ;;  %1920 = vmatprep.subr.bf16.mxu1 %v1919_v42 }
 0x48a   : > { %1948 = vmatprep.subr.bf16.mxu0 %v2286_v17 }
 0x48c   : > { %1922 = vmatpush3.bf16.msra.mxu1 %v1919_v42  ;;  %1870 = vmatmul.mubr.f32.vlgmr.msra.gmra.mrb[0].mxu0 %v1051_v55 }
 0x48d   : > { %1950 = vmatpush3.bf16.msra.mxu0 %v2286_v17  ;;  %1880 = vmatprep.mubr.f32.mxu0 %v1041_v50 }
 0x48e   : > { %1924 = vmatprep.subr.bf16.mxu1 %v1923_v43  ;;  %1952 = vmatprep.subr.bf16.mxu0 %v2294_v22 }
 0x48f   : > { %1837 = vmatmul.mubr.f32.vlgmr.msra.gmra.mrb[0].mxu1 %v1051_v55 }
 0x490   : > { %1926 = vmatpush3.bf16.msra.mxu1 %v1923_v43  ;;  %1847 = vmatprep.mubr.f32.mxu1 %v1042_v52 }
 0x491   : > { %1954 = vmatpush3.bf16.msra.mxu0 %v2294_v22  ;;  %1928 = vmatprep.subr.bf16.mxu1 %v1927_v44 }
 0x494   : > { %1930 = vmatpush3.bf16.msra.mxu1 %v1927_v44  ;;  %1881 = vmatmul.mubr.f32.vlgmr.msra.gmra.mrb[0].mxu0 %v1051_v55 }
 0x497   : > { %1848 = vmatmul.mubr.f32.vlgmr.msra.gmra.mrb[0].mxu1 %v1052_v57 }
 0x566   : > { %1502 = sbr.rel (%p1703_p5) target bundleno = 1391 (0x56f), region = 60 }
 0x567   : > { %v1882_v63 = vpop.f32.mrb[0].mxu0 }
 0x568   : > { %v1490_v0 = vpop.f32.mrb[1].mxu0 }
 0x56a   : > { %v1849_v1 = vpop.f32.mrb[0].mxu1 }
 0x56b   : > { %v1967_v2 = vadd.f32 %v1882_v63, %v1849_v1  ;;  %v1234_v3 = vpop.f32.mrb[1].mxu1 }
 0x56c   : > { %v1968_v4 = vadd.f32 %v1490_v0, %v1234_v3 }
 0x56d   : > { %1505 = vst.msk [vmem:[#allocation4 + $0x8] sm:$0xff] %vm1503_vm15, %v1967_v2 }
 0x56e   : > { %1504 = vst.msk [vmem:[#allocation4] sm:$0xff] %vm1503_vm15, %v1968_v4 }
 0x56f PF: > { %p1706_p7 = scmp.le.s32.totalorder %s2242_s6, 0 }
 0x570   : > { %vm1514_vm0 = vcmask (!%p1706_p7), 130048  }
 0x571   : > { %1509 = sbr.rel (%p1706_p7) target bundleno = 1402 (0x57a), region = 64 }
 0x575   : > { %v1510_v5 = vld [vmem:[#allocation4] sm:$0xff] (!%p1706_p7) }
 0x576   : > { %v1511_v6 = vld [vmem:[#allocation4 + $0x8] sm:$0xff] (!%p1706_p7)  ;;  %v1512_v7 = vadd.f32 (!%p1706_p7), %v1968_v4, %v1510_v5 }
 0x577   : > { %v1513_v8 = vadd.f32 (!%p1706_p7), %v1967_v2, %v1511_v6 }
 0x578   : > { %1515 = vst.msk [vmem:[#allocation4] sm:$0xff] %vm1514_vm0, %v1512_v7 }
 0x579   : > { %1516 = vst.msk [vmem:[#allocation4 + $0x8] sm:$0xff] %vm1514_vm0, %v1513_v8 }
 0x57a PF: > { %1517 = vst.msk [vmem:[%s2258_s23] sm:$0xff] %vm965_vm12, %v2301_v47  ;;  %1518 = vst.msk [vmem:[%s2258_s23 + $0x8] sm:$0xff] %vm965_vm12, %v960_v53  ;;  %1521 = sbr.rel (%p1703_p5) target bundleno = 1411 (0x583), region = 68  ;;  %vm1524_vm1 = vcmask (!%p1703_p5), 130048  }
 0x580   : > { %v1523_v10 = vld [vmem:[#allocation4 + $0x8] sm:$0xff] (!%p1703_p5) }
 0x581   : > { %v1522_v9 = vld [vmem:[#allocation4] sm:$0xff]  ;;  %1526 = vst.msk [vmem:[#allocation7 + $0x8] sm:$0xff] %vm1524_vm1, %v1523_v10 }
 0x582   : > { %1525 = vst.msk [vmem:[#allocation7] sm:$0xff] %vm1524_vm1, %v1522_v9 }
 0x583 PF: > { %s1710_s16 = sshll.u32 %s2247_s8, 7  ;;  %s1545_s9 = sshll.u32 %s2258_s23, 4  ;;  %s2327_s9 = int_to_ptr.vmem [resolvable:$true] %s1545_s9 }
 0x584   : > { %s2324_s7 = scalar_lea.hbm %s2399_s4, %s1710_s16  ;;  %s2331_s6 = scalar_lea.sflag [#allocation6], %s292_s29 }
 0x585   : > { %s2045_s10 = scalar_lea.vmem %s2327_s9, 256  ;;  %s2154_s8 = smov [#allocation5]  }
 0x586   : > { %p2046_p8 = scmp.ne.s32.totalorder %s2327_s9, %s2045_s10  ;;  %s2049_s30 = sshll.u32 %s2154_s8, 4  ;;  %s2050_s30 = int_to_ptr.vmem [resolvable:$false] %s2049_s30 }
 0x587   : > { %s2051_s11 = scalar_lea.vmem %s2050_s30, 512  ;;  %p2052_p11 = scmp.lt.s32.totalorder %s2327_s9, %s2050_s30 }
 0x588   : > { %p2047_p9 = pnand %p2046_p8, %p2227_p4  ;;  %p2053_p12 = scmp.lt.s32.totalorder %s2051_s11, %s2045_s10 }
 0x58a   : > { %p2048_p10 = pneg %p2047_p9  ;;  %p2054_p13 = por %p2053_p12, %p2052_p11 }
 0x58c   : > { %p2055_p0 = pnand %p2054_p13, %p2048_p10 }
 0x58e   : > { %2058 = shalt.err (!%p2055_p0)
}
 0x58f   : > { %s2059_s29 = scalar_lea.hbm %s2324_s7, 256  ;;  %s2063_s13 = scalar_lea.hbm %s2399_s4, 256 }
 0x590   : > { %p2060_p1 = scmp.ne.s32.totalorder %s2324_s7, %s2059_s29  ;;  %p2064_p7 = scmp.lt.u32.totalorder %s2324_s7, %s2399_s4 }
 0x591   : > { %p2065_p8 = scmp.lt.u32.totalorder %s2063_s13, %s2059_s29  ;;  %p2067_p10 = scmp.lt.u32.totalorder %s2059_s29, %s2324_s7 }
 0x592   : > { %p2061_p3 = pnand %p2060_p1, %p2227_p4 }
 0x593   : > { %p2066_p9 = por %p2065_p8, %p2064_p7 }
 0x594   : > { %p2062_p5 = pneg %p2061_p3 }
 0x595   : > { %p2068_p11 = por %p2067_p10, %p2066_p9 }
 0x597   : > { %p2069_p12 = pnand %p2068_p11, %p2062_p5 }
 0x599   : > { %2072 = shalt.err (!%p2069_p12)
}
 0x59a   : > { %s2155_s15 = smov 128   ;;  %s2156_s16 = smov 8  }
 0x59b   : > { %1977 = dma.vmem_to_hbm [thread:$0]  (%p2227_p4), %s2327_s9, 256, %s2324_s7, %s2331_s6, %s2155_s15, %s2155_s15, %s2156_s16  }
 0x59c   : > { %s2157_s17 = smov [#allocation7]  }
 0x59d   : > { %s1561_s24 = sshll.u32 %s2157_s17, 4  ;;  %s1562_s24 = int_to_ptr.vmem [resolvable:$true] %s1561_s24 }
 0x59e   : > { %s2073_s10 = scalar_lea.vmem %s1562_s24, 256  ;;  %p2080_p3 = scmp.lt.s32.totalorder %s1562_s24, %s1562_s24 }
 0x59f   : > { %p2074_p13 = scmp.ne.s32.totalorder %s1562_s24, %s2073_s10  ;;  %p2081_p5 = scmp.lt.s32.totalorder %s2073_s10, %s2073_s10 }
 0x5a1   : > { %p2075_p0 = pnand %p2074_p13, %p2219_p2  ;;  %p2082_p7 = por %p2081_p5, %p2080_p3 }
 0x5a3   : > { %p2076_p1 = pneg %p2075_p0 }
 0x5a5   : > { %p2083_p8 = pnand %p2082_p7, %p2076_p1 }
 0x5a7   : > { %2086 = shalt.err (!%p2083_p8)
}
 0x5a8   : > { %s2087_s11 = scalar_lea.hbm %s2400_s5, 256 }
 0x5a9   : > { %p2088_p4 = scmp.ne.s32.totalorder %s2400_s5, %s2087_s11  ;;  %p2093_p11 = scmp.lt.u32.totalorder %s2087_s11, %s2400_s5 }
 0x5ab   : > { %p2089_p9 = pnand %p2088_p4, %p2219_p2 }
 0x5ad   : > { %p2090_p10 = pneg %p2089_p9 }
 0x5af   : > { %p2095_p12 = pnand %p2093_p11, %p2090_p10 }
 0x5b1   : > { %2098 = shalt.err (!%p2095_p12)
}
 0x5b2   : > { %1979 = dma.vmem_to_hbm [thread:$0]  (%p2219_p2), %s1562_s24, 256, %s2400_s5, [#allocation8], %s2155_s15, %s2155_s15, %s2156_s16  }
 0x5b3   : > { %2124 = dma.done.wait (%p2219_p2), [#allocation8], 256  }
 0x5b4   : > { %2126 = vsyncadd (%p2219_p2), [#allocation8], 4294967040 }
 0x5b5 PF: > { %p1989_p13 = scmp.ge.s32.totalorder %s2150_s22, 2  ;;  %s1580_s12 = sand.u32 1, %s2134_s18  }
 0x5b6   : > { %s1581_s13 = scalar_lea.sflag [#allocation6], %s1580_s12 }
 0x5b7   : > { %p1984_p0 = pnand %p1989_p13, %p2231_p6 }
 0x5b9   : > { %2128 = dma.done.wait (!%p1984_p0), %s1581_s13, 256  }
 0x5ba   : > { %2130 = vsyncadd (!%p1984_p0), %s1581_s13, 4294967040  ;;  %s20_s22 = sadd.s32 1, %s2150_s22   ;;  %s2404_s18 = smov %s2138_s19 }
 0x5bb   : > { %p17_p1 = scmp.ge.s32.totalorder %s20_s22, 4   ;;  %s2385_s19 = smov 0  }
 0x5bc   : > { %s2405_s20 = smov %s2146_s21  ;;  %s2406_s21 = smov %s2408_s25 }
 0x5bd   :  { %19 = sbr.rel (!%p17_p1) target bundleno = 5 (0x5), region = 121 }
 0x5c4   :  { %1586 = vsyncpa [#allocation6], 1 }
 0x5c5   :  { %1588 = vsyncpa [#allocation6 + $0x1], 1 }
 0x5c6   :  { %1589 = vsyncpa [#allocation8], 1 }

</bundles_post_ra>
